<compile_context>
chip_gen: v7x
topology: tpu7x:2x2x1
jax: 0.10.0
libtpu: 0.0.40
codegen_flags: <defaults>
</compile_context>

<pallas_src>
import jax
import jax.numpy as jnp
from jax import lax
from jax.experimental import pallas as pl
from jax.experimental.pallas import tpu as pltpu

_MATMUL_DTYPE = jnp.bfloat16          # MXU input dtype and inter-kernel HBM dtype

_VMEM_LIMIT_CACHE = None


def _vmem_limit_bytes():
    """Generation-aware scoped-VMEM cap: ~3/4 of physical (48 MiB on v7x, 96 MiB on
    v5e/v6e), conservative 48 MiB fallback if the query fails."""
    global _VMEM_LIMIT_CACHE
    if _VMEM_LIMIT_CACHE is None:
        cap = 64 * 1024 * 1024
        try:
            cap = int(getattr(pltpu.get_tpu_info(), "vmem_capacity_bytes", cap))
        except Exception:
            pass
        _VMEM_LIMIT_CACHE = max(32 * 1024 * 1024,
                                min(cap * 3 // 4, 100 * 1024 * 1024))
    return _VMEM_LIMIT_CACHE


def _silu(y):
    # In-kernel SiLU: exp and approximate reciprocal both land on the EUP slot.
    return y * pl.reciprocal(1.0 + jnp.exp(-y), approx=True)


def _silu_ref(y):
    # Reference (non-Pallas) SiLU.
    return y * (1.0 / (1.0 + jnp.exp(-y)))


def _choose_tm(M, tm_max=2048):
    """Row tile for the pointwise kernel: large blocks, ~>=4 grid steps, mult. of 8."""
    if M <= 32:
        return M
    tm = min(tm_max, pl.cdiv(M, 4))
    return max(8, (tm // 8) * 8)


def _choose_th(H, th_max=32):
    """Row tile for the 3x3 conv kernel: a divisor of H (bounds per-tile VMEM),
    preferring >= 2 row tiles so the grid pipelines / shards across cores."""
    if H <= 8:
        return H
    cap = min(th_max, max(1, H // 2))
    best = 1
    for d in range(1, cap + 1):
        if H % d == 0:
            best = d
    return best if best >= 2 else H


# ---------------------------------------------------------------------------
# Kernel 1: fused  cv1 | cv2  (single matmul against concatenated weights)
#           + Bottleneck.cv1 (1x1) chained on the y1 half — all per-M-tile.
#           Outputs: lane-dense y12 = [y1 | y2] (bf16) and b1 (bf16).
# ---------------------------------------------------------------------------
def _cv12_m1_kernel(x_ref, w12_ref, s12_ref, b12_ref, wm_ref, sm_ref, bm_ref,
                    y12_ref, b1_ref):
    c_ = b1_ref.shape[-1]

    y = jnp.dot(x_ref[...], w12_ref[...], preferred_element_type=jnp.float32)
    y = _silu(y * s12_ref[...] + b12_ref[...])            # (tm, 2c_) f32
    y12_ref[...] = y.astype(y12_ref.dtype)                # one wide bf16 store

    # Bottleneck.cv1 (1x1) fused on the same tile — saves a launch + HBM round trip.
    b = jnp.dot(y[:, :c_].astype(wm_ref.dtype), wm_ref[...],
                preferred_element_type=jnp.float32)
    b1_ref[...] = _silu(b * sm_ref[...] + bm_ref[...]).astype(b1_ref.dtype)


def fused_cv1_cv2_m1(x_nhwc, p_cv1, p_cv2, p_m1, tm_max=2048):
    N, H, W, C1 = x_nhwc.shape
    w1, s1, b1 = p_cv1
    w2, s2, b2 = p_cv2
    wm, sm, bm = p_m1
    c_ = w1.shape[1]

    w12 = jnp.concatenate([w1, w2], axis=1).astype(_MATMUL_DTYPE)   # (C1, 2c_)
    s12 = jnp.concatenate([s1, s2]).reshape(1, 2 * c_)
    b12 = jnp.concatenate([b1, b2]).reshape(1, 2 * c_)
    wm = wm.astype(_MATMUL_DTYPE)

    M = N * H * W
    tm = _choose_tm(M, tm_max)
    grid = (pl.cdiv(M, tm),)
    x2d = x_nhwc.reshape(M, C1)

    y12, b1o = pl.pallas_call(
        _cv12_m1_kernel,
        out_shape=(jax.ShapeDtypeStruct((M, 2 * c_), _MATMUL_DTYPE),
                   jax.ShapeDtypeStruct((M, c_), _MATMUL_DTYPE)),
        grid=grid,
        in_specs=[
            pl.BlockSpec((tm, C1), lambda i: (i, 0)),
            pl.BlockSpec((C1, 2 * c_), lambda i: (0, 0)),     # weights stay resident
            pl.BlockSpec((1, 2 * c_), lambda i: (0, 0)),
            pl.BlockSpec((1, 2 * c_), lambda i: (0, 0)),
            pl.BlockSpec((c_, c_), lambda i: (0, 0)),
            pl.BlockSpec((1, c_), lambda i: (0, 0)),
            pl.BlockSpec((1, c_), lambda i: (0, 0)),
        ],
        out_specs=(pl.BlockSpec((tm, 2 * c_), lambda i: (i, 0)),
                   pl.BlockSpec((tm, c_), lambda i: (i, 0))),
        compiler_params=pltpu.CompilerParams(
            dimension_semantics=("parallel",),
            vmem_limit_bytes=_vmem_limit_bytes()),
    )(x2d, w12, s12, b12, wm, sm.reshape(1, c_), bm.reshape(1, c_))

    return y12.reshape(N, H, W, 2 * c_), b1o.reshape(N, H, W, c_)


# ---------------------------------------------------------------------------
# Kernel 2: H-tiled 3x3 'same' conv + folded-BN + SiLU + shortcut (Bottleneck.cv2)
#           with the concat+cv3 epilogue fused in (z1 never touches HBM).
# ---------------------------------------------------------------------------
def _conv3_res_cv3_kernel(b1_ref, halo_ref, y12_ref, wm_ref, sm_ref, bm_ref,
                          w3a_ref, w3b_ref, s3_ref, b3_ref, o_ref, xpad_ref):
    _, th, W, cin = b1_ref.shape
    c2 = o_ref.shape[3]
    cdt = wm_ref.dtype

    # Assemble the (th+2, W+2, cin) halo-padded tile.  Only the interior, the two
    # halo rows and the two zero columns are written — no full-buffer zero fill.
    xpad_ref[1:th + 1, 1:W + 1, :] = b1_ref[0]
    xpad_ref[0:1, 1:W + 1, :] = halo_ref[0, 0:1]
    xpad_ref[th + 1:th + 2, 1:W + 1, :] = halo_ref[0, 1:2]
    zcol = jnp.zeros((th + 2, 1, cin), cdt)
    xpad_ref[:, 0:1, :] = zcol
    xpad_ref[:, W + 1:W + 2, :] = zcol

    # 3x3 conv: one sublane-shifted slab per dw; the dh taps are cheap leading-axis
    # slices; all 9 tap contributions accumulate in a LOCAL f32 value (no scratch RMW).
    acc = None
    for dw in range(3):
        slab = xpad_ref[:, dw:dw + W, :]                    # (th+2, W, cin)
        for dh in range(3):
            xs = slab[dh:dh + th].reshape(th * W, cin)
            c = jnp.dot(xs, wm_ref[dh, dw], preferred_element_type=jnp.float32)
            acc = c if acc is None else acc + c

    # Bottleneck epilogue: BN + SiLU + shortcut (y1), then fused concat+cv3:
    #   out = SiLU(BN( z1 @ W3[:c_] + y2 @ W3[c_:] ))   (the concat never exists)
    y12 = y12_ref[0].reshape(th * W, 2 * cin)               # bf16 [y1 | y2]
    z1 = _silu(acc * sm_ref[...] + bm_ref[...]) + y12[:, :cin].astype(jnp.float32)
    o = jnp.dot(z1.astype(cdt), w3a_ref[...], preferred_element_type=jnp.float32)
    o = o + jnp.dot(y12[:, cin:], w3b_ref[...], preferred_element_type=jnp.float32)
    o = _silu(o * s3_ref[...] + b3_ref[...])
    o_ref[...] = o.reshape(1, th, W, c2).astype(o_ref.dtype)


def _build_halo_rows(b1, th):
    """Per-row-tile halo rows: (N, 2*nH, W, C); rows 2i / 2i+1 are the rows just
    above / below tile i (zero rows at the image border).  Tiny vs. b1 itself."""
    N, H, W, C = b1.shape
    zrow = jnp.zeros((N, 1, W, C), b1.dtype)
    top = jnp.concatenate([zrow, b1[:, th - 1:H - 1:th]], axis=1)   # (N, nH, W, C)
    bot = jnp.concatenate([b1[:, th:H:th], zrow], axis=1)           # (N, nH, W, C)
    return jnp.stack([top, bot], axis=2).reshape(N, -1, W, C)


def conv3_residual_cv3(b1, y12, p_m2, p_cv3):
    """out = SiLU(BN( cat(y1 + SiLU(BN(conv3x3(b1))), y2) @ W3 ))  with y12 = [y1|y2]."""
    N, H, W, c_ = b1.shape
    wm, sm, bm = p_m2                       # (3,3,c_,c_), (c_,), (c_,)
    w3, s3, b3 = p_cv3                      # (2c_, c2), (c2,), (c2,)
    c2 = w3.shape[1]

    th = _choose_th(H)
    assert H % th == 0
    nH = H // th
    halo = _build_halo_rows(b1, th)

    wm = wm.astype(_MATMUL_DTYPE)
    w3a = w3[:c_].astype(_MATMUL_DTYPE)
    w3b = w3[c_:].astype(_MATMUL_DTYPE)

    return pl.pallas_call(
        _conv3_res_cv3_kernel,
        out_shape=jax.ShapeDtypeStruct((N, H, W, c2), jnp.float32),
        grid=(N, nH),
        in_specs=[
            pl.BlockSpec((1, th, W, c_), lambda n, h: (n, h, 0, 0)),
            pl.BlockSpec((1, 2, W, c_), lambda n, h: (n, h, 0, 0)),
            pl.BlockSpec((1, th, W, 2 * c_), lambda n, h: (n, h, 0, 0)),
            pl.BlockSpec((3, 3, c_, c_), lambda n, h: (0, 0, 0, 0)),
            pl.BlockSpec((1, c_), lambda n, h: (0, 0)),
            pl.BlockSpec((1, c_), lambda n, h: (0, 0)),
            pl.BlockSpec((c_, c2), lambda n, h: (0, 0)),
            pl.BlockSpec((c_, c2), lambda n, h: (0, 0)),
            pl.BlockSpec((1, c2), lambda n, h: (0, 0)),
            pl.BlockSpec((1, c2), lambda n, h: (0, 0)),
        ],
        out_specs=pl.BlockSpec((1, th, W, c2), lambda n, h: (n, h, 0, 0)),
        scratch_shapes=[pltpu.VMEM((th + 2, W + 2, c_), _MATMUL_DTYPE)],
        compiler_params=pltpu.CompilerParams(
            dimension_semantics=("parallel", "parallel"),
            vmem_limit_bytes=_vmem_limit_bytes()),
    )(b1, halo, y12, wm, sm.reshape(1, c_), bm.reshape(1, c_),
      w3a, w3b, s3.reshape(1, c2), b3.reshape(1, c2))


# ---------------------------------------------------------------------------
# Parameter setup (deterministic, synthetic) — BN folded into (scale, bias)
# ---------------------------------------------------------------------------
def make_conv_params(key, cin, cout, k, eps=1e-5):
    kw, kg, kb, km, kv = jax.random.split(key, 5)
    fan_in = cin * k * k
    w = jax.random.normal(kw, (k, k, cin, cout), jnp.float32) / jnp.sqrt(fan_in)
    gamma = 1.0 + 0.1 * jax.random.normal(kg, (cout,), jnp.float32)
    beta = 0.1 * jax.random.normal(kb, (cout,), jnp.float32)
    mean = 0.1 * jax.random.normal(km, (cout,), jnp.float32)
    var = 1.0 + 0.1 * jax.random.uniform(kv, (cout,), jnp.float32)
    scale = gamma / jnp.sqrt(var + eps)
    bias = beta - mean * scale
    if k == 1:
        w = w.reshape(cin, cout)      # (Cin, Cout) matmul weight for 1x1 conv
    return (w, scale, bias)


# ---------------------------------------------------------------------------
# C3 forward:  cv3( cat( m(cv1(x)), cv2(x) ) )   with m = 1 Bottleneck (e=1.0)
# ---------------------------------------------------------------------------
def c3_forward(x_nchw, params):
    # NCHW -> NHWC with a single bf16 cast (XLA fuses the cast into the transpose).
    x = jnp.transpose(x_nchw, (0, 2, 3, 1)).astype(_MATMUL_DTYPE)
    y12, b1 = fused_cv1_cv2_m1(x, params["cv1"], params["cv2"], params["m0_cv1"])
    out = conv3_residual_cv3(b1, y12, params["m0_cv2"], params["cv3"])
    return jnp.transpose(out, (0, 3, 1, 2))                  # NHWC -> NCHW (f32)


# Pure-JAX reference mirroring the kernels' numerical recipe
# (bf16 inter-stage intermediates, bf16 MXU inputs, f32 accumulation/elementwise).
def c3_reference(x_nchw, params):
    x = jnp.transpose(x_nchw, (0, 2, 3, 1)).astype(_MATMUL_DTYPE)

    def cbs(x, p, k):
        w, s, b = p
        if k == 1:
            w = w.reshape(1, 1, *w.shape)
        pad = k // 2
        y = lax.conv_general_dilated(
            x.astype(_MATMUL_DTYPE), w.astype(_MATMUL_DTYPE), (1, 1),
            [(pad, pad), (pad, pad)],
            dimension_numbers=("NHWC", "HWIO", "NHWC"),
            preferred_element_type=jnp.float32)
        return _silu_ref(y * s + b)

    y1 = cbs(x, params["cv1"], 1).astype(_MATMUL_DTYPE)
    y2 = cbs(x, params["cv2"], 1).astype(_MATMUL_DTYPE)
    b1 = cbs(y1, params["m0_cv1"], 1).astype(_MATMUL_DTYPE)
    z1 = cbs(b1, params["m0_cv2"], 3) + y1.astype(jnp.float32)
    out = cbs(jnp.concatenate([z1.astype(_MATMUL_DTYPE), y2], axis=-1),
              params["cv3"], 1)
    return jnp.transpose(out, (0, 3, 1, 2))


if __name__ == "__main__":
    key = jax.random.PRNGKey(0)
    c1, c2, n, e = 4, 4, 1, 0.5
    c_ = int(c2 * e)
    keys = jax.random.split(key, 6)
    params = {
        "cv1":    make_conv_params(keys[0], c1, c_, 1),
        "cv2":    make_conv_params(keys[1], c1, c_, 1),
        "cv3":    make_conv_params(keys[2], 2 * c_, c2, 1),
        "m0_cv1": make_conv_params(keys[3], c_, c_, 1),
        "m0_cv2": make_conv_params(keys[4], c_, c_, 3),
    }
    x = jax.random.normal(keys[5], (2, c1, 16, 16), jnp.float32)

    out = jax.block_until_ready(c3_forward(x, params))
    ref = jax.block_until_ready(c3_reference(x, params))
    assert out.shape == (2, c2, 16, 16)
    err = float(jnp.max(jnp.abs(out - ref)))
    assert err < 2e-2, f"max abs err {err}"
    print("KERNEL_OK")
</pallas_src>

<mosaic_0001>
module attributes {stable_mosaic.version = 11 : i64} {
  func.func @_cv12_m1_kernel(%arg0: i32, %arg1: memref<128x4xbf16, #tpu.memory_space<vmem>>, %arg2: memref<4x4xbf16, #tpu.memory_space<vmem>>, %arg3: memref<1x4xf32, #tpu.memory_space<vmem>>, %arg4: memref<1x4xf32, #tpu.memory_space<vmem>>, %arg5: memref<2x2xbf16, #tpu.memory_space<vmem>>, %arg6: memref<1x2xf32, #tpu.memory_space<vmem>>, %arg7: memref<1x2xf32, #tpu.memory_space<vmem>>, %arg8: memref<128x4xbf16, #tpu.memory_space<vmem>>, %arg9: memref<128x2xbf16, #tpu.memory_space<vmem>>) attributes {dimension_semantics = [#tpu.dimension_semantics<parallel>], iteration_bounds = array<i64: 4>, scalar_prefetch = 0 : i64, scratch_operands = 0 : i64, tpu.core_type = #tpu.core_type<tc>, window_params = [{transform_indices = @transform_0, window_bounds = array<i64: 128, 4>}, {pipeline_mode = #tpu.pipeline_mode<synchronous>, transform_indices = @transform_1, window_bounds = array<i64: 4, 4>}, {pipeline_mode = #tpu.pipeline_mode<synchronous>, transform_indices = @transform_2, window_bounds = array<i64: 1, 4>}, {pipeline_mode = #tpu.pipeline_mode<synchronous>, transform_indices = @transform_3, window_bounds = array<i64: 1, 4>}, {pipeline_mode = #tpu.pipeline_mode<synchronous>, transform_indices = @transform_4, window_bounds = array<i64: 2, 2>}, {pipeline_mode = #tpu.pipeline_mode<synchronous>, transform_indices = @transform_5, window_bounds = array<i64: 1, 2>}, {pipeline_mode = #tpu.pipeline_mode<synchronous>, transform_indices = @transform_6, window_bounds = array<i64: 1, 2>}, {transform_indices = @transform_7, window_bounds = array<i64: 128, 4>}, {transform_indices = @transform_8, window_bounds = array<i64: 128, 2>}]} {
    %c0 = arith.constant 0 : index
    %c0_0 = arith.constant 0 : index
    %0 = vector.load %arg1[%c0, %c0_0] : memref<128x4xbf16, #tpu.memory_space<vmem>>, vector<128x4xbf16>
    %c0_1 = arith.constant 0 : index
    %c0_2 = arith.constant 0 : index
    %1 = vector.load %arg2[%c0_1, %c0_2] : memref<4x4xbf16, #tpu.memory_space<vmem>>, vector<4x4xbf16>
    %cst = arith.constant dense<0.000000e+00> : vector<128x4xf32>
    %2 = tpu.matmul %0, %1, %cst {dimension_numbers = #tpu.dot_dimension_numbers<[1], [0], [0], [1], [0, 0, 1, 1], [], []>} : vector<128x4xbf16>, vector<4x4xbf16>, vector<128x4xf32> -> vector<128x4xf32>
    %c0_3 = arith.constant 0 : index
    %c0_4 = arith.constant 0 : index
    %3 = vector.load %arg3[%c0_3, %c0_4] : memref<1x4xf32, #tpu.memory_space<vmem>>, vector<1x4xf32>
    %4 = vector.broadcast %3 : vector<1x4xf32> to vector<128x4xf32>
    %5 = arith.mulf %2, %4 : vector<128x4xf32>
    %c0_5 = arith.constant 0 : index
    %c0_6 = arith.constant 0 : index
    %6 = vector.load %arg4[%c0_5, %c0_6] : memref<1x4xf32, #tpu.memory_space<vmem>>, vector<1x4xf32>
    %7 = vector.broadcast %6 : vector<1x4xf32> to vector<128x4xf32>
    %8 = arith.addf %5, %7 : vector<128x4xf32>
    %cst_7 = arith.constant 0.000000e+00 : f32
    %9 = vector.broadcast %cst_7 : f32 to vector<128x4xf32>
    %10 = arith.subf %9, %8 : vector<128x4xf32>
    %11 = math.exp %10 : vector<128x4xf32>
    %cst_8 = arith.constant 1.000000e+00 : f32
    %12 = vector.broadcast %cst_8 : f32 to vector<128x4xf32>
    %13 = arith.addf %12, %11 : vector<128x4xf32>
    %14 = tpu.reciprocal %13 {approx = true} : vector<128x4xf32> -> vector<128x4xf32>
    %15 = arith.mulf %8, %14 : vector<128x4xf32>
    %16 = arith.truncf %15 : vector<128x4xf32> to vector<128x4xbf16>
    %c0_9 = arith.constant 0 : index
    %c0_10 = arith.constant 0 : index
    %17 = vector.load %arg8[%c0_9, %c0_10] : memref<128x4xbf16, #tpu.memory_space<vmem>>, vector<128x4xbf16>
    tpu.vector_store %arg8[%c0_9, %c0_10], %16 {strides = array<i32>} : memref<128x4xbf16, #tpu.memory_space<vmem>>, vector<128x4xbf16>,
    %18 = vector.extract_strided_slice %15 {offsets = [0, 0], sizes = [128, 2], strides = [1, 1]} : vector<128x4xf32> to vector<128x2xf32>
    %19 = arith.truncf %18 : vector<128x2xf32> to vector<128x2xbf16>
    %c0_11 = arith.constant 0 : index
    %c0_12 = arith.constant 0 : index
    %20 = vector.load %arg5[%c0_11, %c0_12] : memref<2x2xbf16, #tpu.memory_space<vmem>>, vector<2x2xbf16>
    %cst_13 = arith.constant dense<0.000000e+00> : vector<128x2xf32>
    %21 = tpu.matmul %19, %20, %cst_13 {dimension_numbers = #tpu.dot_dimension_numbers<[1], [0], [0], [1], [0, 0, 1, 1], [], []>} : vector<128x2xbf16>, vector<2x2xbf16>, vector<128x2xf32> -> vector<128x2xf32>
    %c0_14 = arith.constant 0 : index
    %c0_15 = arith.constant 0 : index
    %22 = vector.load %arg6[%c0_14, %c0_15] : memref<1x2xf32, #tpu.memory_space<vmem>>, vector<1x2xf32>
    %23 = vector.broadcast %22 : vector<1x2xf32> to vector<128x2xf32>
    %24 = arith.mulf %21, %23 : vector<128x2xf32>
    %c0_16 = arith.constant 0 : index
    %c0_17 = arith.constant 0 : index
    %25 = vector.load %arg7[%c0_16, %c0_17] : memref<1x2xf32, #tpu.memory_space<vmem>>, vector<1x2xf32>
    %26 = vector.broadcast %25 : vector<1x2xf32> to vector<128x2xf32>
    %27 = arith.addf %24, %26 : vector<128x2xf32>
    %cst_18 = arith.constant 0.000000e+00 : f32
    %28 = vector.broadcast %cst_18 : f32 to vector<128x2xf32>
    %29 = arith.subf %28, %27 : vector<128x2xf32>
    %30 = math.exp %29 : vector<128x2xf32>
    %cst_19 = arith.constant 1.000000e+00 : f32
    %31 = vector.broadcast %cst_19 : f32 to vector<128x2xf32>
    %32 = arith.addf %31, %30 : vector<128x2xf32>
    %33 = tpu.reciprocal %32 {approx = true} : vector<128x2xf32> -> vector<128x2xf32>
    %34 = arith.mulf %27, %33 : vector<128x2xf32>
    %35 = arith.truncf %34 : vector<128x2xf32> to vector<128x2xbf16>
    %c0_20 = arith.constant 0 : index
    %c0_21 = arith.constant 0 : index
    %36 = vector.load %arg9[%c0_20, %c0_21] : memref<128x2xbf16, #tpu.memory_space<vmem>>, vector<128x2xbf16>
    tpu.vector_store %arg9[%c0_20, %c0_21], %35 {strides = array<i32>} : memref<128x2xbf16, #tpu.memory_space<vmem>>, vector<128x2xbf16>,
    return
  }
  func.func @transform_0(%arg0: i32) -> (i32, i32) {
    %c0_i32 = arith.constant 0 : i32
    %c0_i32_0 = arith.constant 0 : i32
    return %arg0, %c0_i32 : i32, i32
  }
  func.func @transform_1(%arg0: i32) -> (i32, i32) {
    %c0_i32 = arith.constant 0 : i32
    %c0_i32_0 = arith.constant 0 : i32
    %c0_i32_1 = arith.constant 0 : i32
    return %c0_i32, %c0_i32_0 : i32, i32
  }
  func.func @transform_2(%arg0: i32) -> (i32, i32) {
    %c0_i32 = arith.constant 0 : i32
    %c0_i32_0 = arith.constant 0 : i32
    %c0_i32_1 = arith.constant 0 : i32
    return %c0_i32, %c0_i32_0 : i32, i32
  }
  func.func @transform_3(%arg0: i32) -> (i32, i32) {
    %c0_i32 = arith.constant 0 : i32
    %c0_i32_0 = arith.constant 0 : i32
    %c0_i32_1 = arith.constant 0 : i32
    return %c0_i32, %c0_i32_0 : i32, i32
  }
  func.func @transform_4(%arg0: i32) -> (i32, i32) {
    %c0_i32 = arith.constant 0 : i32
    %c0_i32_0 = arith.constant 0 : i32
    %c0_i32_1 = arith.constant 0 : i32
    return %c0_i32, %c0_i32_0 : i32, i32
  }
  func.func @transform_5(%arg0: i32) -> (i32, i32) {
    %c0_i32 = arith.constant 0 : i32
    %c0_i32_0 = arith.constant 0 : i32
    %c0_i32_1 = arith.constant 0 : i32
    return %c0_i32, %c0_i32_0 : i32, i32
  }
  func.func @transform_6(%arg0: i32) -> (i32, i32) {
    %c0_i32 = arith.constant 0 : i32
    %c0_i32_0 = arith.constant 0 : i32
    %c0_i32_1 = arith.constant 0 : i32
    return %c0_i32, %c0_i32_0 : i32, i32
  }
  func.func @transform_7(%arg0: i32) -> (i32, i32) {
    %c0_i32 = arith.constant 0 : i32
    %c0_i32_0 = arith.constant 0 : i32
    return %arg0, %c0_i32 : i32, i32
  }
  func.func @transform_8(%arg0: i32) -> (i32, i32) {
    %c0_i32 = arith.constant 0 : i32
    %c0_i32_0 = arith.constant 0 : i32
    return %arg0, %c0_i32 : i32, i32
  }
}

</mosaic_0001>

<bundles_post_ra>
// kernel: tpu_custom_call.1
= control target key start
LH: loop header
LB: loop body
LE: loop exit
PB: predicated region body
PF: predicated region fallthrough
CT: control target
= control target key end

     0   :  { %s1528_s27 = smov 0   ;;  %s1855_s0 = inlined_call_operand.vmem [shape: bf16[512,4], index: 0, kind: input, shape index: {}]   ;;  %s1856_s1 = inlined_call_operand.vmem [shape: bf16[4,4], index: 1, kind: input, shape index: {}]   ;;  %s1857_s2 = inlined_call_operand.vmem [shape: f32[1,4], index: 2, kind: input, shape index: {}]   ;;  %s1858_s3 = inlined_call_operand.vmem [shape: f32[1,4], index: 3, kind: input, shape index: {}]   ;;  %s1859_s4 = inlined_call_operand.vmem [shape: bf16[2,2], index: 4, kind: input, shape index: {}]   ;;  %s1860_s5 = inlined_call_operand.vmem [shape: f32[1,2], index: 5, kind: input, shape index: {}]   ;;  %s1861_s6 = inlined_call_operand.vmem [shape: f32[1,2], index: 6, kind: input, shape index: {}]   ;;  %s1862_s7 = inlined_call_operand.vmem [shape: bf16[512,4], index: 7, kind: output, shape index: {0}]   ;;  %s1863_s8 = inlined_call_operand.vmem [shape: bf16[512,2], index: 8, kind: output, shape index: {1}]  }
   0x1 LB: > { %s1170_s28 = sadd.s32 4294967295, %s1481_s27   ;;  %p1174_p0 = scmp.ge.s32.totalorder %s1481_s27, 1  ;;  %s1481_s27 = sphi %s1528_s27, %s19_s27  }
   0x2   : > { %p266_p1 = scmp.lt.s32.totalorder %s1481_s27, 5 }
   0x4   : > { %p267_p2 = pnand %p1174_p0, %p266_p1 }
   0x5   : > { %v340_v0 = vld [vmem:[%s1856_s1] sm:$0x3] (!%p267_p2)  ;;  %vm406_vm0 = vcmask (!%p267_p2), 1041408   ;;  %s1175_s9 = sshll.u32 (!%p267_p2), %s1170_s28, 4  ;;  %vm381_vm1 = vcmask (!%p267_p2), 31744   ;;  %vm756_vm2 = vcmask (!%p267_p2), 1040384  }
   0x6   : > { %270 = sbr.rel (%p267_p2) target bundleno = 547 (0x223), region = 48  ;;  %1329 = vmatprep.subr.msk.bf16.mxu0 (!%p267_p2), %vm406_vm0, %v340_v0  ;;  %v408_v1 = vsel (!%p267_p2), %vm406_vm0, %v340_v0, 0  ;;  %p306_p3 = scmp.lt.s32.totalorder (!%p267_p2), %s1175_s9, 63  ;;  %v730_v10 = vld [vmem:[%s1859_s4] sm:$0x1] (!%p267_p2)  ;;  %vm713_vm3 = vcmask (!%p267_p2), 27648  }
   0x7   : > { %1294 = vmatpush3.bf16.msra.mxu0 (!%p267_p2), %v408_v1  ;;  %1330 = vmatprep.subr.msk.bf16.mxu1 (!%p267_p2), %vm756_vm2, %v730_v10  ;;  %v758_v11 = vsel (!%p267_p2), %vm756_vm2, %v730_v10, 0  ;;  %v1559_v12 = vld [vmem:[%s1857_s2] ss:$0 sm:$0xff] (!%p267_p2)  ;;  %vm731_vm4 = vcmask (!%p267_p2), 15360   ;;  %vm1063_vm5 = vcmask (!%p267_p2), 11264  }
   0x8   : > { %1312 = vmatpush3.bf16.msra.mxu1 (!%p267_p2), %v758_v11  ;;  %v1564_v14 = vld [vmem:[%s1858_s3] ss:$0 sm:$0xff] (!%p267_p2) }
   0xd   : > { %s1865_s9 = smov (!%p306_p3, %s1175_s9), 63 }
   0xe   : > { %s1539_s10 = sshll.u32 %s1865_s9, 2 }
   0xf   : > { %s309_s13 = scalar_lea.vmem %s1855_s0, %s1539_s10  ;;  %s1651_s22 = scalar_lea.vmem %s1862_s7, %s1539_s10 }
  0x10   : > { %v1339_v2 = vld [vmem:[%s309_s13] sm:$0xff]   ;;  %v1340_v3 = vld [vmem:[%s309_s13 + $0x8] sm:$0xff]   ;;  %v1341_v4 = vld [vmem:[%s309_s13 + $0x10] sm:$0xff]   ;;  %s1803_s30 = scalar_lea.vmem %s1863_s8, %s1539_s10 }
  0x11   : > { %1295 = vmatprep.mubr.msk.bf16.mxu0 %vm381_vm1, %v1339_v2  ;;  %v1342_v5 = vld [vmem:[%s309_s13 + $0x18] sm:$0xff]   ;;  %v1343_v6 = vld [vmem:[%s309_s13 + $0x20] sm:$0xff]   ;;  %v1344_v7 = vld [vmem:[%s309_s13 + $0x28] sm:$0xff]  }
  0x12   : > { %1296 = vmatmul.mubr.msk.bf16.vlgmr.msra.gmra.mrb[0].mxu0 %vm381_vm1, %v1340_v3  ;;  %v1345_v8 = vld [vmem:[%s309_s13 + $0x30] sm:$0xff]   ;;  %v1346_v9 = vld [vmem:[%s309_s13 + $0x38] sm:$0xff]  }
  0x13   : > { %1299 = vmatprep.mubr.msk.bf16.mxu0 %vm381_vm1, %v1341_v4 }
  0x1a   : > { %1300 = vmatmul.mubr.msk.bf16.gmra.mrb[4].mxu0 %vm381_vm1, %v1342_v5 }
  0x1b   : > { %1303 = vmatprep.mubr.msk.bf16.mxu0 %vm381_vm1, %v1343_v6 }
  0x22   : > { %1304 = vmatmul.mubr.msk.bf16.gmra.mrb[8].mxu0 %vm381_vm1, %v1344_v7 }
  0x23   : > { %1307 = vmatprep.mubr.msk.bf16.mxu0 %vm381_vm1, %v1345_v8 }
  0x2a   : > { %1308 = vmatmul.mubr.msk.bf16.gmra.mrb[12].mxu0 %vm381_vm1, %v1346_v9 }
  0xe5   : > { %v1297_v13 = vpop.f32.mrb[0].mxu0 }
  0xe6   : > { %v516_v15 = vmul.f32 %v1297_v13, %v1559_v12  ;;  %v444_v16 = vpop.f32.mrb[1].mxu0 }
  0xe7   : > { %v514_v17 = vmul.f32 %v1559_v12, %v444_v16  ;;  %v1298_v18 = vpop.f32.mrb[2].mxu0 }
  0xe8   : > { %v1569_v19 = vadd.f32 %v1564_v14, %v516_v15  ;;  %v517_v20 = vmul.f32 %v1298_v18, %v1559_v12  ;;  %v447_v21 = vpop.f32.mrb[3].mxu0 }
  0xe9   : > { %v1573_v22 = vadd.f32 %v1564_v14, %v514_v17  ;;  %v515_v23 = vmul.f32 %v1559_v12, %v447_v21 }
  0xea   : > { %v555_v24 = vsub.f32 0.0, %v1569_v19  ;;  %v1578_v25 = vadd.f32 %v1564_v14, %v517_v20 }
  0xeb   : > { %v553_v26 = vsub.f32 0.0, %v1573_v22  ;;  %v1582_v27 = vadd.f32 %v1564_v14, %v515_v23 }
  0xec   : > { %v573_v28 = vmul.f32 1.442695, %v555_v24  ;;  %v556_v29 = vsub.f32 0.0, %v1578_v25 }
  0xed   : > { %v569_v30 = vmul.f32 1.442695, %v553_v26  ;;  %v554_v31 = vsub.f32 0.0, %v1582_v27  ;;  %v1301_v32 = vpop.f32.mrb[4].mxu0 }
  0xee   : > { %1347 = vpow2.f32 %v573_v28  ;;  %v575_v33 = vmul.f32 1.442695, %v556_v29  ;;  %v520_v34 = vmul.f32 %v1301_v32, %v1559_v12  ;;  %v460_v35 = vpop.f32.mrb[5].mxu0 }
  0xef   : > { %1349 = vpow2.f32 %v569_v30  ;;  %v571_v36 = vmul.f32 1.442695, %v554_v31  ;;  %v518_v37 = vmul.f32 %v1559_v12, %v460_v35  ;;  %v1302_v38 = vpop.f32.mrb[6].mxu0 }
  0xf0   : > { %1351 = vpow2.f32 %v575_v33  ;;  %v1589_v39 = vadd.f32 %v1564_v14, %v520_v34  ;;  %v521_v40 = vmul.f32 %v1302_v38, %v1559_v12  ;;  %v463_v41 = vpop.f32.mrb[7].mxu0 }
  0xf1   : > { %1353 = vpow2.f32 %v571_v36  ;;  %v1593_v42 = vadd.f32 %v1564_v14, %v518_v37  ;;  %v519_v43 = vmul.f32 %v1559_v12, %v463_v41 }
  0xf2   : > { %v559_v44 = vsub.f32 0.0, %v1589_v39  ;;  %v1598_v45 = vadd.f32 %v1564_v14, %v521_v40 }
  0xf3   : > { %v557_v46 = vsub.f32 0.0, %v1593_v42  ;;  %v1602_v47 = vadd.f32 %v1564_v14, %v519_v43 }
  0xf4   : > { %v581_v48 = vmul.f32 1.442695, %v559_v44  ;;  %v560_v49 = vsub.f32 0.0, %v1598_v45 }
  0xf5   : > { %v577_v50 = vmul.f32 1.442695, %v557_v46  ;;  %v558_v51 = vsub.f32 0.0, %v1602_v47  ;;  %v1305_v52 = vpop.f32.mrb[8].mxu0 }
  0xf6   : > { %1355 = vpow2.f32 %v581_v48  ;;  %v583_v53 = vmul.f32 1.442695, %v560_v49  ;;  %v524_v54 = vmul.f32 %v1305_v52, %v1559_v12  ;;  %v476_v55 = vpop.f32.mrb[9].mxu0 }
  0xf7   : > { %1357 = vpow2.f32 %v577_v50  ;;  %v579_v56 = vmul.f32 1.442695, %v558_v51  ;;  %v522_v57 = vmul.f32 %v1559_v12, %v476_v55  ;;  %v1306_v58 = vpop.f32.mrb[10].mxu0 }
  0xf8   : > { %v1348_v59 = vpop.eup %1347  ;;  %1359 = vpow2.f32 %v583_v53  ;;  %v1609_v60 = vadd.f32 %v1564_v14, %v524_v54  ;;  %v525_v61 = vmul.f32 %v1306_v58, %v1559_v12  ;;  %v479_v62 = vpop.f32.mrb[11].mxu0 }
  0xf9   : > { %v1350_v63 = vpop.eup %1349  ;;  %v603_v0 = vadd.f32 1.0, %v1348_v59  ;;  %1361 = vpow2.f32 %v579_v56  ;;  %v1613_v1 = vadd.f32 %v1564_v14, %v522_v57  ;;  %v523_v2 = vmul.f32 %v1559_v12, %v479_v62 }
  0xfa   : > { %v1352_v3 = vpop.eup %1351  ;;  %v601_v4 = vadd.f32 1.0, %v1350_v63  ;;  %v563_v5 = vsub.f32 0.0, %v1609_v60  ;;  %v1618_v6 = vadd.f32 %v1564_v14, %v525_v61 }
  0xfb   : > { %v1354_v7 = vpop.eup %1353  ;;  %1363 = vrcp.f32 %v603_v0  ;;  %v604_v8 = vadd.f32 1.0, %v1352_v3  ;;  %v561_v9 = vsub.f32 0.0, %v1613_v1  ;;  %v1622_v10 = vadd.f32 %v1564_v14, %v523_v2 }
  0xfc   : > { %1365 = vrcp.f32 %v601_v4  ;;  %v602_v11 = vadd.f32 1.0, %v1354_v7  ;;  %v589_v13 = vmul.f32 1.442695, %v563_v5  ;;  %v564_v15 = vsub.f32 0.0, %v1618_v6 }
  0xfd   : > { %1367 = vrcp.f32 %v604_v8  ;;  %v585_v16 = vmul.f32 1.442695, %v561_v9  ;;  %v562_v17 = vsub.f32 0.0, %v1622_v10  ;;  %v1309_v18 = vpop.f32.mrb[12].mxu0 }
  0xfe   : > { %1369 = vrcp.f32 %v602_v11  ;;  %v591_v20 = vmul.f32 1.442695, %v564_v15  ;;  %v528_v21 = vmul.f32 %v1309_v18, %v1559_v12  ;;  %v492_v23 = vpop.f32.mrb[13].mxu0 }
  0xff   : > { %1371 = vpow2.f32 %v589_v13  ;;  %v587_v24 = vmul.f32 1.442695, %v562_v17  ;;  %v526_v26 = vmul.f32 %v1559_v12, %v492_v23  ;;  %v1310_v28 = vpop.f32.mrb[14].mxu0 }
 0x100   : > { %v1356_v29 = vpop.eup %1355  ;;  %1373 = vpow2.f32 %v585_v16  ;;  %v1629_v30 = vadd.f32 %v1564_v14, %v528_v21  ;;  %v529_v31 = vmul.f32 %v1310_v28, %v1559_v12  ;;  %v495_v32 = vpop.f32.mrb[15].mxu0 }
 0x101   : > { %v1358_v33 = vpop.eup %1357  ;;  %v607_v34 = vadd.f32 1.0, %v1356_v29  ;;  %1375 = vpow2.f32 %v591_v20  ;;  %v1633_v35 = vadd.f32 %v1564_v14, %v526_v26  ;;  %v527_v36 = vmul.f32 %v1559_v12, %v495_v32 }
 0x102   : > { %v1360_v37 = vpop.eup %1359  ;;  %v605_v38 = vadd.f32 1.0, %v1358_v33  ;;  %1377 = vpow2.f32 %v587_v24  ;;  %v567_v40 = vsub.f32 0.0, %v1629_v30  ;;  %v1638_v41 = vadd.f32 %v1564_v14, %v529_v31 }
 0x103   : > { %v1362_v43 = vpop.eup %1361  ;;  %1379 = vrcp.f32 %v607_v34  ;;  %v608_v44 = vadd.f32 1.0, %v1360_v37  ;;  %v565_v46 = vsub.f32 0.0, %v1633_v35  ;;  %v1642_v48 = vadd.f32 %v1564_v14, %v527_v36 }
 0x104   : > { %1381 = vrcp.f32 %v605_v38  ;;  %v606_v49 = vadd.f32 1.0, %v1362_v43  ;;  %v597_v12 = vmul.f32 1.442695, %v567_v40  ;;  %v568_v50 = vsub.f32 0.0, %v1638_v41 }
 0x105   : > { %v1364_v51 = vpop.eup %1363  ;;  %1383 = vrcp.f32 %v608_v44  ;;  %v593_v52 = vmul.f32 1.442695, %v565_v46  ;;  %v566_v53 = vsub.f32 0.0, %v1642_v48 }
 0x106   : > { %v1366_v54 = vpop.eup %1365  ;;  %v635_v55 = vmul.f32 %v1364_v51, %v1569_v19  ;;  %1385 = vrcp.f32 %v606_v49  ;;  %v599_v56 = vmul.f32 1.442695, %v568_v50 }
 0x107   : > { %v1368_v57 = vpop.eup %1367  ;;  %1387 = vpow2.f32 %v597_v12  ;;  %v595_v14 = vmul.f32 1.442695, %v566_v53  ;;  %v633_v58 = vmul.f32 %v1366_v54, %v1573_v22 }
 0x108   : > { %v1370_v59 = vpop.eup %1369  ;;  %v1245_v61 = vpack.c.bf16 %v635_v55, %v635_v55  ;;  %v636_v62 = vmul.f32 %v1368_v57, %v1578_v25  ;;  %1389 = vpow2.f32 %v593_v52 }
 0x109   : > { %v1372_v19 = vpop.eup %1371  ;;  %1391 = vpow2.f32 %v599_v56  ;;  %v634_v63 = vmul.f32 %v1370_v59, %v1582_v27  ;;  %v1243_v0 = vpack.c.bf16 %v633_v58, %v633_v58 }
 0x10a   : > { %v1374_v2 = vpop.eup %1373  ;;  %716 = vst.msk [vmem:[%s1651_s22 + $0x8] sm:$0xf] %vm713_vm3, %v1245_v61  ;;  %v650_v3 = vpack.c.bf16 %v636_v62, %v635_v55  ;;  %v1246_v4 = vpack.c.bf16 %v636_v62, %v636_v62  ;;  %v611_v22 = vadd.f32 1.0, %v1372_v19  ;;  %1393 = vpow2.f32 %v595_v14 }
 0x10b   : > { %v1376_v5 = vpop.eup %1375  ;;  %v609_v7 = vadd.f32 1.0, %v1374_v2  ;;  %v649_v25 = vpack.c.bf16 %v634_v63, %v633_v58  ;;  %v1244_v8 = vpack.c.bf16 %v634_v63, %v634_v63  ;;  %714 = vst.msk [vmem:[%s1651_s22] sm:$0xf] %vm713_vm3, %v1243_v0 }
 0x10c   : > { %v1378_v9 = vpop.eup %1377  ;;  %717 = vst.msk [vmem:[%s1651_s22 + $0xc] sm:$0xf] %vm713_vm3, %v1246_v4  ;;  %1395 = vrcp.f32 %v611_v22  ;;  %v612_v27 = vadd.f32 1.0, %v1376_v5 }
 0x10d   : > { %v1380_v11 = vpop.eup %1379  ;;  %1397 = vrcp.f32 %v609_v7  ;;  %v610_v13 = vadd.f32 1.0, %v1378_v9  ;;  %715 = vst.msk [vmem:[%s1651_s22 + $0x4] sm:$0xf] %vm713_vm3, %v1244_v8  ;;  %1313 = vmatprep.mubr.msk.bf16.mxu1 %vm731_vm4, %v649_v25 }
 0x10e   : > { %v1382_v15 = vpop.eup %1381  ;;  %v639_v16 = vmul.f32 %v1380_v11, %v1589_v39  ;;  %1399 = vrcp.f32 %v612_v27  ;;  %1314 = vmatmul.mubr.msk.bf16.vlgmr.msra.gmra.mrb[0].mxu1 %vm731_vm4, %v650_v3 }
 0x10f   : > { %v1384_v17 = vpop.eup %1383  ;;  %v637_v18 = vmul.f32 %v1382_v15, %v1593_v42  ;;  %1401 = vrcp.f32 %v610_v13 }
 0x110   : > { %v1386_v20 = vpop.eup %1385  ;;  %v1249_v21 = vpack.c.bf16 %v639_v16, %v639_v16  ;;  %v640_v23 = vmul.f32 %v1384_v17, %v1598_v45 }
 0x111   : > { %v1388_v24 = vpop.eup %1387  ;;  %v1247_v26 = vpack.c.bf16 %v637_v18, %v637_v18  ;;  %v638_v28 = vmul.f32 %v1386_v20, %v1602_v47 }
 0x112   : > { %v1390_v29 = vpop.eup %1389  ;;  %720 = vst.msk [vmem:[%s1651_s22 + $0x18] sm:$0xf] %vm713_vm3, %v1249_v21  ;;  %v652_v39 = vpack.c.bf16 %v640_v23, %v639_v16  ;;  %v1250_v31 = vpack.c.bf16 %v640_v23, %v640_v23  ;;  %v615_v32 = vadd.f32 1.0, %v1388_v24 }
 0x113   : > { %v1392_v33 = vpop.eup %1391  ;;  %718 = vst.msk [vmem:[%s1651_s22 + $0x10] sm:$0xf] %vm713_vm3, %v1247_v26  ;;  %v651_v42 = vpack.c.bf16 %v638_v28, %v637_v18  ;;  %v1248_v34 = vpack.c.bf16 %v638_v28, %v638_v28  ;;  %v613_v36 = vadd.f32 1.0, %v1390_v29 }
 0x114   : > { %v1394_v37 = vpop.eup %1393  ;;  %721 = vst.msk [vmem:[%s1651_s22 + $0x1c] sm:$0xf] %vm713_vm3, %v1250_v31  ;;  %1403 = vrcp.f32 %v615_v32  ;;  %v616_v45 = vadd.f32 1.0, %v1392_v33 }
 0x115   : > { %719 = vst.msk [vmem:[%s1651_s22 + $0x14] sm:$0xf] %vm713_vm3, %v1248_v34  ;;  %1405 = vrcp.f32 %v613_v36  ;;  %v614_v47 = vadd.f32 1.0, %v1394_v37  ;;  %1317 = vmatprep.mubr.msk.bf16.mxu1 %vm731_vm4, %v651_v42 }
 0x116   : > { %v1396_v38 = vpop.eup %1395  ;;  %1407 = vrcp.f32 %v616_v45  ;;  %1318 = vmatmul.mubr.msk.bf16.gmra.mrb[4].mxu1 %vm731_vm4, %v652_v39 }
 0x117   : > { %v1398_v40 = vpop.eup %1397  ;;  %v643_v43 = vmul.f32 %v1396_v38, %v1609_v60  ;;  %1409 = vrcp.f32 %v614_v47 }
 0x118   : > { %v1400_v44 = vpop.eup %1399  ;;  %v641_v46 = vmul.f32 %v1398_v40, %v1613_v1 }
 0x119   : > { %v1402_v49 = vpop.eup %1401  ;;  %v1253_v12 = vpack.c.bf16 %v643_v43, %v643_v43  ;;  %v644_v50 = vmul.f32 %v1400_v44, %v1618_v6 }
 0x11a   : > { %v1251_v51 = vpack.c.bf16 %v641_v46, %v641_v46  ;;  %v642_v52 = vmul.f32 %v1402_v49, %v1622_v10 }
 0x11b   : > { %724 = vst.msk [vmem:[%s1651_s22 + $0x28] sm:$0xf] %vm713_vm3, %v1253_v12  ;;  %v654_v53 = vpack.c.bf16 %v644_v50, %v643_v43  ;;  %v1254_v54 = vpack.c.bf16 %v644_v50, %v644_v50 }
 0x11c   : > { %722 = vst.msk [vmem:[%s1651_s22 + $0x20] sm:$0xf] %vm713_vm3, %v1251_v51  ;;  %v653_v55 = vpack.c.bf16 %v642_v52, %v641_v46  ;;  %v1252_v60 = vpack.c.bf16 %v642_v52, %v642_v52 }
 0x11d   : > { %725 = vst.msk [vmem:[%s1651_s22 + $0x2c] sm:$0xf] %vm713_vm3, %v1254_v54 }
 0x11e   : > { %v1404_v56 = vpop.eup %1403  ;;  %723 = vst.msk [vmem:[%s1651_s22 + $0x24] sm:$0xf] %vm713_vm3, %v1252_v60  ;;  %1321 = vmatprep.mubr.msk.bf16.mxu1 %vm731_vm4, %v653_v55 }
 0x11f   : > { %v1406_v1 = vpop.eup %1405  ;;  %v647_v6 = vmul.f32 %v1404_v56, %v1629_v30  ;;  %1322 = vmatmul.mubr.msk.bf16.gmra.mrb[8].mxu1 %vm731_vm4, %v654_v53 }
 0x120   : > { %v1408_v10 = vpop.eup %1407  ;;  %v645_v57 = vmul.f32 %v1406_v1, %v1633_v35  ;;  %v1711_v35 = vld [vmem:[%s1860_s5] ss:$0 sm:$0xff] }
 0x121   : > { %v1410_v14 = vpop.eup %1409  ;;  %v1257_v58 = vpack.c.bf16 %v647_v6, %v647_v6  ;;  %v648_v59 = vmul.f32 %v1408_v10, %v1638_v41 }
 0x122   : > { %v1255_v61 = vpack.c.bf16 %v645_v57, %v645_v57  ;;  %v646_v62 = vmul.f32 %v1410_v14, %v1642_v48  ;;  %v1716_v48 = vld [vmem:[%s1861_s6] ss:$0 sm:$0xff] }
 0x123   : > { %728 = vst.msk [vmem:[%s1651_s22 + $0x38] sm:$0xf] %vm713_vm3, %v1257_v58  ;;  %v656_v19 = vpack.c.bf16 %v648_v59, %v647_v6  ;;  %v1258_v63 = vpack.c.bf16 %v648_v59, %v648_v59 }
 0x124   : > { %726 = vst.msk [vmem:[%s1651_s22 + $0x30] sm:$0xf] %vm713_vm3, %v1255_v61  ;;  %v655_v30 = vpack.c.bf16 %v646_v62, %v645_v57  ;;  %v1256_v0 = vpack.c.bf16 %v646_v62, %v646_v62 }
 0x125   : > { %729 = vst.msk [vmem:[%s1651_s22 + $0x3c] sm:$0xf] %vm713_vm3, %v1258_v63 }
 0x126   : > { %727 = vst.msk [vmem:[%s1651_s22 + $0x34] sm:$0xf] %vm713_vm3, %v1256_v0  ;;  %1325 = vmatprep.mubr.msk.bf16.mxu1 %vm731_vm4, %v655_v30 }
 0x127   : > { %1326 = vmatmul.mubr.msk.bf16.gmra.mrb[12].mxu1 %vm731_vm4, %v656_v19 }
 0x1e1   : > { %v1315_v41 = vpop.f32.mrb[0].mxu1 }
 0x1e2   : > { %v866_v2 = vmul.f32 %v1315_v41, %v1711_v35  ;;  %v794_v3 = vpop.f32.mrb[1].mxu1 }
 0x1e3   : > { %v864_v4 = vmul.f32 %v1711_v35, %v794_v3  ;;  %v1316_v22 = vpop.f32.mrb[2].mxu1 }
 0x1e4   : > { %v1721_v5 = vadd.f32 %v1716_v48, %v866_v2  ;;  %v867_v7 = vmul.f32 %v1316_v22, %v1711_v35  ;;  %v797_v25 = vpop.f32.mrb[3].mxu1 }
 0x1e5   : > { %v1725_v8 = vadd.f32 %v1716_v48, %v864_v4  ;;  %v865_v9 = vmul.f32 %v1711_v35, %v797_v25 }
 0x1e6   : > { %v905_v27 = vsub.f32 0.0, %v1721_v5  ;;  %v1730_v11 = vadd.f32 %v1716_v48, %v867_v7 }
 0x1e7   : > { %v903_v13 = vsub.f32 0.0, %v1725_v8  ;;  %v1734_v15 = vadd.f32 %v1716_v48, %v865_v9 }
 0x1e8   : > { %v923_v16 = vmul.f32 1.442695, %v905_v27  ;;  %v906_v17 = vsub.f32 0.0, %v1730_v11 }
 0x1e9   : > { %v919_v18 = vmul.f32 1.442695, %v903_v13  ;;  %v904_v20 = vsub.f32 0.0, %v1734_v15  ;;  %v1319_v21 = vpop.f32.mrb[4].mxu1 }
 0x1ea   : > { %1411 = vpow2.f32 %v923_v16  ;;  %v925_v23 = vmul.f32 1.442695, %v906_v17  ;;  %v870_v24 = vmul.f32 %v1319_v21, %v1711_v35  ;;  %v810_v26 = vpop.f32.mrb[5].mxu1 }
 0x1eb   : > { %1413 = vpow2.f32 %v919_v18  ;;  %v921_v28 = vmul.f32 1.442695, %v904_v20  ;;  %v868_v29 = vmul.f32 %v1711_v35, %v810_v26  ;;  %v1320_v39 = vpop.f32.mrb[6].mxu1 }
 0x1ec   : > { %1415 = vpow2.f32 %v925_v23  ;;  %v1741_v31 = vadd.f32 %v1716_v48, %v870_v24  ;;  %v871_v32 = vmul.f32 %v1320_v39, %v1711_v35  ;;  %v813_v33 = vpop.f32.mrb[7].mxu1 }
 0x1ed   : > { %1417 = vpow2.f32 %v921_v28  ;;  %v1745_v42 = vadd.f32 %v1716_v48, %v868_v29  ;;  %v869_v34 = vmul.f32 %v1711_v35, %v813_v33 }
 0x1ee   : > { %v909_v36 = vsub.f32 0.0, %v1741_v31  ;;  %v1750_v37 = vadd.f32 %v1716_v48, %v871_v32 }
 0x1ef   : > { %v907_v45 = vsub.f32 0.0, %v1745_v42  ;;  %v1754_v47 = vadd.f32 %v1716_v48, %v869_v34 }
 0x1f0   : > { %v931_v38 = vmul.f32 1.442695, %v909_v36  ;;  %v910_v40 = vsub.f32 0.0, %v1750_v37 }
 0x1f1   : > { %v927_v43 = vmul.f32 1.442695, %v907_v45  ;;  %v908_v44 = vsub.f32 0.0, %v1754_v47 }
 0x1f2   : > { %1419 = vpow2.f32 %v931_v38  ;;  %v933_v46 = vmul.f32 1.442695, %v910_v40  ;;  %v1323_v49 = vpop.f32.mrb[8].mxu1 }
 0x1f3   : > { %1421 = vpow2.f32 %v927_v43  ;;  %v929_v12 = vmul.f32 1.442695, %v908_v44  ;;  %v874_v50 = vmul.f32 %v1323_v49, %v1711_v35  ;;  %v826_v51 = vpop.f32.mrb[9].mxu1 }
 0x1f4   : > { %v1412_v52 = vpop.eup %1411  ;;  %1423 = vpow2.f32 %v933_v46  ;;  %v872_v53 = vmul.f32 %v1711_v35, %v826_v51  ;;  %v1324_v54 = vpop.f32.mrb[10].mxu1 }
 0x1f5   : > { %v1414_v55 = vpop.eup %1413  ;;  %v953_v60 = vadd.f32 1.0, %v1412_v52  ;;  %1425 = vpow2.f32 %v929_v12  ;;  %v1761_v56 = vadd.f32 %v1716_v48, %v874_v50  ;;  %v875_v1 = vmul.f32 %v1324_v54, %v1711_v35  ;;  %v829_v6 = vpop.f32.mrb[11].mxu1 }
 0x1f6   : > { %v1416_v10 = vpop.eup %1415  ;;  %v951_v57 = vadd.f32 1.0, %v1414_v55  ;;  %v1765_v14 = vadd.f32 %v1716_v48, %v872_v53  ;;  %v873_v58 = vmul.f32 %v1711_v35, %v829_v6 }
 0x1f7   : > { %v1418_v59 = vpop.eup %1417  ;;  %1427 = vrcp.f32 %v953_v60  ;;  %v954_v61 = vadd.f32 1.0, %v1416_v10  ;;  %v913_v62 = vsub.f32 0.0, %v1761_v56  ;;  %v1770_v19 = vadd.f32 %v1716_v48, %v875_v1 }
 0x1f8   : > { %1429 = vrcp.f32 %v951_v57  ;;  %v952_v63 = vadd.f32 1.0, %v1418_v59  ;;  %v911_v30 = vsub.f32 0.0, %v1765_v14  ;;  %v1774_v0 = vadd.f32 %v1716_v48, %v873_v58 }
 0x1f9   : > { %1431 = vrcp.f32 %v954_v61  ;;  %v939_v41 = vmul.f32 1.442695, %v913_v62  ;;  %v914_v2 = vsub.f32 0.0, %v1770_v19 }
 0x1fa   : > { %1433 = vrcp.f32 %v952_v63  ;;  %v935_v3 = vmul.f32 1.442695, %v911_v30  ;;  %v912_v4 = vsub.f32 0.0, %v1774_v0  ;;  %v1327_v22 = vpop.f32.mrb[12].mxu1 }
 0x1fb   : > { %1435 = vpow2.f32 %v939_v41  ;;  %v941_v7 = vmul.f32 1.442695, %v914_v2  ;;  %v878_v25 = vmul.f32 %v1327_v22, %v1711_v35  ;;  %v842_v9 = vpop.f32.mrb[13].mxu1 }
 0x1fc   : > { %v1420_v27 = vpop.eup %1419  ;;  %1437 = vpow2.f32 %v935_v3  ;;  %v937_v13 = vmul.f32 1.442695, %v912_v4  ;;  %v876_v16 = vmul.f32 %v1711_v35, %v842_v9  ;;  %v1328_v17 = vpop.f32.mrb[14].mxu1 }
 0x1fd   : > { %v1422_v18 = vpop.eup %1421  ;;  %v957_v20 = vadd.f32 1.0, %v1420_v27  ;;  %1439 = vpow2.f32 %v941_v7  ;;  %v1781_v21 = vadd.f32 %v1716_v48, %v878_v25  ;;  %v879_v23 = vmul.f32 %v1328_v17, %v1711_v35  ;;  %v845_v24 = vpop.f32.mrb[15].mxu1 }
 0x1fe   : > { %v1424_v26 = vpop.eup %1423  ;;  %v955_v28 = vadd.f32 1.0, %v1422_v18  ;;  %1441 = vpow2.f32 %v937_v13  ;;  %v1785_v29 = vadd.f32 %v1716_v48, %v876_v16  ;;  %v877_v39 = vmul.f32 %v1711_v35, %v845_v24 }
 0x1ff   : > { %v1426_v32 = vpop.eup %1425  ;;  %1443 = vrcp.f32 %v957_v20  ;;  %v958_v33 = vadd.f32 1.0, %v1424_v26  ;;  %v917_v34 = vsub.f32 0.0, %v1781_v21  ;;  %v1790_v36 = vadd.f32 %v1716_v48, %v879_v23 }
 0x200   : > { %1445 = vrcp.f32 %v955_v28  ;;  %v956_v45 = vadd.f32 1.0, %v1426_v32  ;;  %v915_v38 = vsub.f32 0.0, %v1785_v29  ;;  %v1794_v40 = vadd.f32 %v1716_v48, %v877_v39 }
 0x201   : > { %v1428_v43 = vpop.eup %1427  ;;  %1447 = vrcp.f32 %v958_v33  ;;  %v947_v44 = vmul.f32 1.442695, %v917_v34  ;;  %v918_v35 = vsub.f32 0.0, %v1790_v36 }
 0x202   : > { %v1430_v46 = vpop.eup %1429  ;;  %v985_v49 = vmul.f32 %v1428_v43, %v1721_v5  ;;  %1449 = vrcp.f32 %v956_v45  ;;  %v943_v12 = vmul.f32 1.442695, %v915_v38  ;;  %v916_v50 = vsub.f32 0.0, %v1794_v40 }
 0x203   : > { %v1432_v51 = vpop.eup %1431  ;;  %v983_v48 = vmul.f32 %v1430_v46, %v1725_v8  ;;  %1451 = vpow2.f32 %v947_v44  ;;  %v949_v52 = vmul.f32 1.442695, %v918_v35 }
 0x204   : > { %v1434_v53 = vpop.eup %1433  ;;  %v1261_v54 = vpack.c.bf16 %v985_v49, %v985_v49  ;;  %v986_v5 = vmul.f32 %v1432_v51, %v1730_v11  ;;  %1453 = vpow2.f32 %v943_v12  ;;  %v945_v55 = vmul.f32 1.442695, %v916_v50 }
 0x205   : > { %v1436_v60 = vpop.eup %1435  ;;  %v1259_v1 = vpack.c.bf16 %v983_v48, %v983_v48  ;;  %v984_v6 = vmul.f32 %v1434_v53, %v1734_v15  ;;  %1455 = vpow2.f32 %v949_v52 }
 0x206   : > { %v1438_v10 = vpop.eup %1437  ;;  %1066 = vst.msk [vmem:[%s1803_s30 + $0x8] sm:$0xf] %vm1063_vm5, %v1261_v54  ;;  %v1262_v8 = vpack.c.bf16 %v986_v5, %v986_v5  ;;  %v961_v57 = vadd.f32 1.0, %v1436_v60  ;;  %1457 = vpow2.f32 %v945_v55 }
 0x207   : > { %v1440_v58 = vpop.eup %1439  ;;  %1064 = vst.msk [vmem:[%s1803_s30] sm:$0xf] %vm1063_vm5, %v1259_v1  ;;  %v1260_v59 = vpack.c.bf16 %v984_v6, %v984_v6  ;;  %v959_v11 = vadd.f32 1.0, %v1438_v10 }
 0x208   : > { %v1442_v61 = vpop.eup %1441  ;;  %1067 = vst.msk [vmem:[%s1803_s30 + $0xc] sm:$0xf] %vm1063_vm5, %v1262_v8  ;;  %1459 = vrcp.f32 %v961_v57  ;;  %v962_v62 = vadd.f32 1.0, %v1440_v58 }
 0x209   : > { %v1444_v63 = vpop.eup %1443  ;;  %1065 = vst.msk [vmem:[%s1803_s30 + $0x4] sm:$0xf] %vm1063_vm5, %v1260_v59  ;;  %1461 = vrcp.f32 %v959_v11  ;;  %v960_v15 = vadd.f32 1.0, %v1442_v61 }
 0x20a   : > { %v1446_v30 = vpop.eup %1445  ;;  %v989_v41 = vmul.f32 %v1444_v63, %v1741_v31  ;;  %1463 = vrcp.f32 %v962_v62 }
 0x20b   : > { %v1448_v2 = vpop.eup %1447  ;;  %v987_v3 = vmul.f32 %v1446_v30, %v1745_v42  ;;  %1465 = vrcp.f32 %v960_v15 }
 0x20c   : > { %v1450_v4 = vpop.eup %1449  ;;  %v1265_v22 = vpack.c.bf16 %v989_v41, %v989_v41  ;;  %v990_v7 = vmul.f32 %v1448_v2, %v1750_v37 }
 0x20d   : > { %v1452_v25 = vpop.eup %1451  ;;  %v1263_v9 = vpack.c.bf16 %v987_v3, %v987_v3  ;;  %v988_v27 = vmul.f32 %v1450_v4, %v1754_v47 }
 0x20e   : > { %v1454_v13 = vpop.eup %1453  ;;  %1070 = vst.msk [vmem:[%s1803_s30 + $0x18] sm:$0xf] %vm1063_vm5, %v1265_v22  ;;  %v1266_v31 = vpack.c.bf16 %v990_v7, %v990_v7  ;;  %v965_v16 = vadd.f32 1.0, %v1452_v25 }
 0x20f   : > { %v1456_v17 = vpop.eup %1455  ;;  %1068 = vst.msk [vmem:[%s1803_s30 + $0x10] sm:$0xf] %vm1063_vm5, %v1263_v9  ;;  %v1264_v42 = vpack.c.bf16 %v988_v27, %v988_v27  ;;  %v963_v18 = vadd.f32 1.0, %v1454_v13 }
 0x210   : > { %v1458_v20 = vpop.eup %1457  ;;  %1071 = vst.msk [vmem:[%s1803_s30 + $0x1c] sm:$0xf] %vm1063_vm5, %v1266_v31  ;;  %1467 = vrcp.f32 %v965_v16  ;;  %v966_v37 = vadd.f32 1.0, %v1456_v17 }
 0x211   : > { %1069 = vst.msk [vmem:[%s1803_s30 + $0x14] sm:$0xf] %vm1063_vm5, %v1264_v42  ;;  %1469 = vrcp.f32 %v963_v18  ;;  %v964_v47 = vadd.f32 1.0, %v1458_v20 }
 0x212   : > { %v1460_v23 = vpop.eup %1459  ;;  %1471 = vrcp.f32 %v966_v37 }
 0x213   : > { %v1462_v24 = vpop.eup %1461  ;;  %v993_v26 = vmul.f32 %v1460_v23, %v1761_v56  ;;  %1473 = vrcp.f32 %v964_v47 }
 0x214   : > { %v1464_v28 = vpop.eup %1463  ;;  %v991_v39 = vmul.f32 %v1462_v24, %v1765_v14 }
 0x215   : > { %v1466_v32 = vpop.eup %1465  ;;  %v1269_v33 = vpack.c.bf16 %v993_v26, %v993_v26  ;;  %v994_v34 = vmul.f32 %v1464_v28, %v1770_v19 }
 0x216   : > { %v1267_v45 = vpack.c.bf16 %v991_v39, %v991_v39  ;;  %v992_v38 = vmul.f32 %v1466_v32, %v1774_v0 }
 0x217   : > { %1074 = vst.msk [vmem:[%s1803_s30 + $0x28] sm:$0xf] %vm1063_vm5, %v1269_v33  ;;  %v1270_v43 = vpack.c.bf16 %v994_v34, %v994_v34 }
 0x218   : > { %1072 = vst.msk [vmem:[%s1803_s30 + $0x20] sm:$0xf] %vm1063_vm5, %v1267_v45  ;;  %v1268_v44 = vpack.c.bf16 %v992_v38, %v992_v38 }
 0x219   : > { %1075 = vst.msk [vmem:[%s1803_s30 + $0x2c] sm:$0xf] %vm1063_vm5, %v1270_v43 }
 0x21a   : > { %v1468_v56 = vpop.eup %1467  ;;  %1073 = vst.msk [vmem:[%s1803_s30 + $0x24] sm:$0xf] %vm1063_vm5, %v1268_v44 }
 0x21b   : > { %v1470_v14 = vpop.eup %1469  ;;  %v997_v19 = vmul.f32 %v1468_v56, %v1781_v21 }
 0x21c   : > { %v1472_v35 = vpop.eup %1471  ;;  %v995_v0 = vmul.f32 %v1470_v14, %v1785_v29 }
 0x21d   : > { %v1474_v46 = vpop.eup %1473  ;;  %v1273_v49 = vpack.c.bf16 %v997_v19, %v997_v19  ;;  %v998_v12 = vmul.f32 %v1472_v35, %v1790_v36 }
 0x21e   : > { %v1271_v50 = vpack.c.bf16 %v995_v0, %v995_v0  ;;  %v996_v51 = vmul.f32 %v1474_v46, %v1794_v40 }
 0x21f   : > { %1078 = vst.msk [vmem:[%s1803_s30 + $0x38] sm:$0xf] %vm1063_vm5, %v1273_v49  ;;  %v1274_v48 = vpack.c.bf16 %v998_v12, %v998_v12 }
 0x220   : > { %1076 = vst.msk [vmem:[%s1803_s30 + $0x30] sm:$0xf] %vm1063_vm5, %v1271_v50  ;;  %v1272_v52 = vpack.c.bf16 %v996_v51, %v996_v51 }
 0x221   : > { %1079 = vst.msk [vmem:[%s1803_s30 + $0x3c] sm:$0xf] %vm1063_vm5, %v1274_v48 }
 0x222   : > { %1077 = vst.msk [vmem:[%s1803_s30 + $0x34] sm:$0xf] %vm1063_vm5, %v1272_v52 }
 0x223 PF: > { %s19_s27 = sadd.s32 1, %s1481_s27  }
 0x224   : > { %p16_p4 = scmp.ge.s32.totalorder %s19_s27, 6  }
 0x226   :  { %18 = sbr.rel (!%p16_p4) target bundleno = 1 (0x1), region = 90 }

</bundles_post_ra>
